<compile_context>
chip_gen: v6e
topology: v6e:2x2x1
jax: 0.10.0
libtpu: 0.0.40
codegen_flags: <defaults>
</compile_context>

<pallas_src>
import functools
import math

import jax
import jax.numpy as jnp
from jax.experimental import pallas as pl
from jax.experimental.pallas import tpu as pltpu

NUM_CLASSES = 11
DICE_WEIGHT = 1.0
CE_WEIGHT = 1.0
DICE_EPS = 1e-7        # smp soft_dice_score eps (smooth defaults to 0.0)
_LANE = 128            # TPU lane width; accumulators / partial outputs are this wide


def _combined_loss_kernel(preds_ref, tgt_ref,
                          inter_out, psum_out, osum_out, ce_out,
                          inter_acc, psum_acc, osum_acc, ce_acc,
                          *, tile, sub, hw, num_classes, steps, need_mask):
    ch = pl.program_id(1)          # HW-chunk index (parallel)
    t = pl.program_id(2)           # pixel-tile step within the chunk (reduction)

    @pl.when(t == 0)
    def _init():
        inter_acc[...] = jnp.zeros_like(inter_acc)
        psum_acc[...] = jnp.zeros_like(psum_acc)
        osum_acc[...] = jnp.zeros_like(osum_acc)
        ce_acc[...] = jnp.zeros_like(ce_acc)

    # Logical pixel offset of this block (can overshoot hw for the clamped
    # trailing block of an odd tile count; it is then fully masked below).
    base = (ch * steps + t) * tile

    n_sub = tile // sub
    k_fold = sub // _LANE

    # Loop-invariant iotas hoisted out of the inner loop (JAX does not CSE them).
    cls_iota = jax.lax.broadcasted_iota(jnp.int32, (num_classes, sub), 0)
    lane_iota = jax.lax.broadcasted_iota(jnp.int32, (1, sub), 1)

    def _fold(x):                                   # (R, sub) -> (R, 128)
        r = x[:, 0:_LANE]                           # lane-aligned static slices
        for q in range(1, k_fold):
            r = r + x[:, q * _LANE:(q + 1) * _LANE]
        return r

    # Fully-unrolled inner column loop (static slices => zero-cost ref views);
    # decouples the big DMA tile from the compute working set so nothing spills.
    for j in range(n_sub):
        lo = j * sub
        logits = preds_ref[:, lo:lo + sub].astype(jnp.float32)   # (C, sub)
        tgt = tgt_ref[:, lo:lo + sub].astype(jnp.int32)          # (1, sub)

        if need_mask:
            valid = (base + lo + lane_iota) < hw                 # (1, sub) bool
            # Mask BEFORE exp() so out-of-range lanes can never inject NaN/Inf.
            logits = jnp.where(valid, logits, 0.0)

        # Numerically stable softmax / log-softmax over the class (sublane) axis.
        m = jnp.max(logits, axis=0, keepdims=True)               # (1, sub)
        shifted = logits - m
        e = jnp.exp(shifted)
        denom = jnp.sum(e, axis=0, keepdims=True)                # (1, sub)
        inv = pl.reciprocal(denom, approx=True)                  # EUP approx
        inv = inv * (2.0 - denom * inv)                          # Newton -> ~exact
        probs = e * inv
        log_denom = jnp.log(denom)

        # Boolean target mask (no float one-hot, no int->float converts).
        is_tgt = cls_iota == tgt                                 # (C, sub) bool
        if need_mask:
            is_tgt = jnp.logical_and(is_tgt, valid)
            probs_v = jnp.where(valid, probs, 0.0)
            ce_row = jnp.where(valid, log_denom, 0.0)
        else:
            probs_v = probs
            ce_row = log_denom
        # per-pixel CE = -log p[target] = log(denom) - shifted[target]
        ce_row = ce_row - jnp.sum(jnp.where(is_tgt, shifted, 0.0),
                                  axis=0, keepdims=True)

        # Fold each sub-column's contribution to 128 lanes, then a tiny RMW into
        # the narrow accumulators (no tile-wide accumulator traffic).
        inter_acc[...] += _fold(jnp.where(is_tgt, probs, 0.0))
        psum_acc[...] += _fold(probs_v)
        osum_acc[...] += _fold(jnp.where(is_tgt, 1.0, 0.0))
        ce_acc[...] += _fold(ce_row)

    @pl.when(t == steps - 1)
    def _emit():
        inter_out[...] = inter_acc[...]
        psum_out[...] = psum_acc[...]
        osum_out[...] = osum_acc[...]
        ce_out[...] = ce_acc[...]


def combined_loss(preds_nchw, targets_nhw, dice_weight=DICE_WEIGHT,
                  ce_weight=CE_WEIGHT, tile=32768):
    """preds_nchw: (N, C, H, W) logits (any float dtype, e.g. bf16 passes straight
    through); targets_nhw: (N, H, W) integer class ids (native dtype, cast in-kernel)."""
    n, c, h, w = preds_nchw.shape
    hw = h * w
    total = n * hw

    # NCHW already gives class-major, HW-contiguous rows: the (N, C, HW) view is
    # free.  No transpose, no upcast, no padding copy, no target dtype cast.
    preds = preds_nchw.reshape(n, c, hw)
    targets = targets_nhw.reshape(n, 1, hw)

    # Pixel tile: multiple of the 128-lane width, as large as useful (default 32K
    # lanes: input double-buffers ~3 MB f32 / ~1.5 MB bf16 -- well under every
    # chip's scoped VMEM default, while amortizing the ~0.35us/step grid overhead).
    tile = int(tile)
    if hw >= _LANE:
        tile = min(tile, (hw // _LANE) * _LANE)
    tile = max(_LANE, (tile // _LANE) * _LANE)
    # Inner compute column: largest power-of-two multiple of 128 (<= 1024) that
    # divides the tile.
    sub = _LANE * math.gcd(tile // _LANE, 8)

    num_t = pl.cdiv(hw, tile)
    # Split the pixel tiles into two parallel chunks so a v7x megacore keeps both
    # TensorCores busy even at batch=1; on v5e/v6e the grid is just a loop.
    n_chunks = 2 if num_t >= 2 else 1
    steps = pl.cdiv(num_t, n_chunks)
    need_mask = (n_chunks * steps * tile) != hw

    if n_chunks * steps > num_t:
        # Odd tile count: the last (chunk, step) block would overshoot; clamp its
        # DMA to the last real block -- the kernel masks it to zero anyway.
        def pix_blk(ch, t):
            return jnp.minimum(ch * steps + t, num_t - 1)
    else:
        def pix_blk(ch, t):
            return ch * steps + t

    kernel = functools.partial(_combined_loss_kernel, tile=tile, sub=sub, hw=hw,
                               num_classes=c, steps=steps, need_mask=need_mask)

    out_shape = (
        jax.ShapeDtypeStruct((n, n_chunks, c, _LANE), jnp.float32),  # intersection
        jax.ShapeDtypeStruct((n, n_chunks, c, _LANE), jnp.float32),  # prob sum
        jax.ShapeDtypeStruct((n, n_chunks, c, _LANE), jnp.float32),  # one-hot sum
        jax.ShapeDtypeStruct((n, n_chunks, 1, _LANE), jnp.float32),  # CE sum
    )
    stat_spec = pl.BlockSpec((None, None, c, _LANE), lambda i, ch, t: (i, ch, 0, 0))
    ce_spec = pl.BlockSpec((None, None, 1, _LANE), lambda i, ch, t: (i, ch, 0, 0))

    grid_spec = pltpu.PrefetchScalarGridSpec(
        num_scalar_prefetch=0,
        grid=(n, n_chunks, steps),
        in_specs=[
            pl.BlockSpec((None, c, tile), lambda i, ch, t: (i, 0, pix_blk(ch, t))),
            pl.BlockSpec((None, 1, tile), lambda i, ch, t: (i, 0, pix_blk(ch, t))),
        ],
        out_specs=(stat_spec, stat_spec, stat_spec, ce_spec),
        scratch_shapes=[
            pltpu.VMEM((c, _LANE), jnp.float32),   # intersection accumulator
            pltpu.VMEM((c, _LANE), jnp.float32),   # prob-sum accumulator
            pltpu.VMEM((c, _LANE), jnp.float32),   # one-hot-sum accumulator
            pltpu.VMEM((1, _LANE), jnp.float32),   # cross-entropy accumulator
        ],
    )

    inter_p, psum_p, osum_p, ce_p = pl.pallas_call(
        kernel,
        out_shape=out_shape,
        grid_spec=grid_spec,
        compiler_params=pltpu.CompilerParams(
            dimension_semantics=("parallel", "parallel", "arbitrary")),
    )(preds, targets)

    # Tiny final combine on the per-(image, chunk) / per-lane partials (pure JAX).
    inter_c = jnp.sum(inter_p, axis=(0, 1, 3))
    psum_c = jnp.sum(psum_p, axis=(0, 1, 3))
    osum_c = jnp.sum(osum_p, axis=(0, 1, 3))
    ce_sum = jnp.sum(ce_p)

    card = psum_c + osum_c
    dice_score = 2.0 * inter_c / jnp.maximum(card, DICE_EPS)
    present = (osum_c > 0.0).astype(jnp.float32)        # class appears in targets
    dice_loss = jnp.sum((1.0 - dice_score) * present) / jnp.float32(c)
    ce_loss = ce_sum / jnp.float32(total)
    return dice_weight * dice_loss + ce_weight * ce_loss


def combined_loss_ref(preds_nchw, targets_nhw, dice_weight=DICE_WEIGHT,
                      ce_weight=CE_WEIGHT):
    """Pure-JAX reference mirroring smp DiceLoss(multiclass) + nn.CrossEntropyLoss."""
    n, c, h, w = preds_nchw.shape
    logits = jnp.transpose(preds_nchw, (0, 2, 3, 1)).reshape(-1, c).astype(jnp.float32)
    tgt = targets_nhw.reshape(-1).astype(jnp.int32)

    logp = jax.nn.log_softmax(logits, axis=-1)
    probs = jnp.exp(logp)
    onehot = jax.nn.one_hot(tgt, c, dtype=jnp.float32)

    inter = jnp.sum(probs * onehot, axis=0)
    card = jnp.sum(probs + onehot, axis=0)
    dice_score = 2.0 * inter / jnp.maximum(card, DICE_EPS)
    loss_c = (1.0 - dice_score) * (jnp.sum(onehot, axis=0) > 0).astype(jnp.float32)
    dice_loss = jnp.mean(loss_c)

    ce_loss = -jnp.mean(jnp.sum(onehot * logp, axis=-1))
    return dice_weight * dice_loss + ce_weight * ce_loss


if __name__ == "__main__":
    key = jax.random.PRNGKey(0)
    k1, k2, k3, k4, k5, k6 = jax.random.split(key, 6)

    # Check 1: H*W = 256 (lane-aligned) -- one pixel tile per image, exercises
    # the "parallel" batch axis with two images.
    preds1 = jax.random.normal(k1, (2, NUM_CLASSES, 16, 16), dtype=jnp.float32)
    tgts1 = jax.random.randint(k2, (2, 16, 16), 0, NUM_CLASSES, dtype=jnp.int32)
    out1 = jax.block_until_ready(combined_loss(preds1, tgts1))
    ref1 = combined_loss_ref(preds1, tgts1)
    assert jnp.allclose(out1, ref1, rtol=1e-4, atol=1e-4), (out1, ref1)

    # Check 2: H*W = 400 with tile=128 -- multi-step accumulation across two HW
    # chunks plus a ragged (where-masked) final block, no wrapper padding.
    preds2 = jax.random.normal(k3, (2, NUM_CLASSES, 20, 20), dtype=jnp.float32)
    tgts2 = jax.random.randint(k4, (2, 20, 20), 0, NUM_CLASSES, dtype=jnp.int32)
    out2 = jax.block_until_ready(combined_loss(preds2, tgts2, tile=128))
    ref2 = combined_loss_ref(preds2, tgts2)
    assert jnp.allclose(out2, ref2, rtol=1e-4, atol=1e-4), (out2, ref2)

    # Check 3: batch=1, H*W = 384 with tile=128 -> 3 tiles split over 2 parallel
    # chunks; exercises the clamped, fully-masked overshoot block.
    preds3 = jax.random.normal(k5, (1, NUM_CLASSES, 24, 16), dtype=jnp.float32)
    tgts3 = jax.random.randint(k6, (1, 24, 16), 0, NUM_CLASSES, dtype=jnp.int32)
    out3 = jax.block_until_ready(combined_loss(preds3, tgts3, tile=128))
    ref3 = combined_loss_ref(preds3, tgts3)
    assert jnp.allclose(out3, ref3, rtol=1e-4, atol=1e-4), (out3, ref3)

    print("KERNEL_OK")
</pallas_src>

<mosaic_0001>
module attributes {stable_mosaic.version = 11 : i64} {
  func.func @_combined_loss_kernel(%arg0: i32, %arg1: i32, %arg2: i32, %arg3: memref<1x11x256xf32, #tpu.memory_space<vmem>>, %arg4: memref<1x1x256xi32, #tpu.memory_space<vmem>>, %arg5: memref<1x1x11x128xf32, #tpu.memory_space<vmem>>, %arg6: memref<1x1x11x128xf32, #tpu.memory_space<vmem>>, %arg7: memref<1x1x11x128xf32, #tpu.memory_space<vmem>>, %arg8: memref<1x1x1x128xf32, #tpu.memory_space<vmem>>, %arg9: memref<11x128xf32, #tpu.memory_space<vmem>>, %arg10: memref<11x128xf32, #tpu.memory_space<vmem>>, %arg11: memref<11x128xf32, #tpu.memory_space<vmem>>, %arg12: memref<1x128xf32, #tpu.memory_space<vmem>>) attributes {dimension_semantics = [#tpu.dimension_semantics<parallel>, #tpu.dimension_semantics<parallel>, #tpu.dimension_semantics<arbitrary>], iteration_bounds = array<i64: 2, 1, 1>, scalar_prefetch = 0 : i64, scratch_operands = 4 : i64, tpu.core_type = #tpu.core_type<tc>, window_params = [{transform_indices = @transform_0, window_bounds = array<i64: 1, 11, 256>}, {transform_indices = @transform_1, window_bounds = array<i64: 1, 1, 256>}, {transform_indices = @transform_2, window_bounds = array<i64: 1, 1, 11, 128>}, {transform_indices = @transform_3, window_bounds = array<i64: 1, 1, 11, 128>}, {transform_indices = @transform_4, window_bounds = array<i64: 1, 1, 11, 128>}, {transform_indices = @transform_5, window_bounds = array<i64: 1, 1, 1, 128>}]} {
    %c0_i32 = arith.constant 0 : i32
    %0 = arith.cmpi eq, %arg2, %c0_i32 : i32
    %1 = arith.extui %0 : i1 to i32
    %c0_i32_0 = arith.constant 0 : i32
    %2 = arith.cmpi ne, %1, %c0_i32_0 : i32
    scf.if %2 {
      %cst_31 = arith.constant 0.000000e+00 : f32
      %62 = vector.broadcast %cst_31 : f32 to vector<11x128xf32>
      %c0_32 = arith.constant 0 : index
      %c0_33 = arith.constant 0 : index
      %63 = vector.load %arg9[%c0_32, %c0_33] : memref<11x128xf32, #tpu.memory_space<vmem>>, vector<11x128xf32>
      tpu.vector_store %arg9[%c0_32, %c0_33], %62 {strides = array<i32>} : memref<11x128xf32, #tpu.memory_space<vmem>>, vector<11x128xf32>,
      %cst_34 = arith.constant 0.000000e+00 : f32
      %64 = vector.broadcast %cst_34 : f32 to vector<11x128xf32>
      %c0_35 = arith.constant 0 : index
      %c0_36 = arith.constant 0 : index
      %65 = vector.load %arg10[%c0_35, %c0_36] : memref<11x128xf32, #tpu.memory_space<vmem>>, vector<11x128xf32>
      tpu.vector_store %arg10[%c0_35, %c0_36], %64 {strides = array<i32>} : memref<11x128xf32, #tpu.memory_space<vmem>>, vector<11x128xf32>,
      %cst_37 = arith.constant 0.000000e+00 : f32
      %66 = vector.broadcast %cst_37 : f32 to vector<11x128xf32>
      %c0_38 = arith.constant 0 : index
      %c0_39 = arith.constant 0 : index
      %67 = vector.load %arg11[%c0_38, %c0_39] : memref<11x128xf32, #tpu.memory_space<vmem>>, vector<11x128xf32>
      tpu.vector_store %arg11[%c0_38, %c0_39], %66 {strides = array<i32>} : memref<11x128xf32, #tpu.memory_space<vmem>>, vector<11x128xf32>,
      %cst_40 = arith.constant 0.000000e+00 : f32
      %68 = vector.broadcast %cst_40 : f32 to vector<1x128xf32>
      %c0_41 = arith.constant 0 : index
      %c0_42 = arith.constant 0 : index
      %69 = vector.load %arg12[%c0_41, %c0_42] : memref<1x128xf32, #tpu.memory_space<vmem>>, vector<1x128xf32>
      tpu.vector_store %arg12[%c0_41, %c0_42], %68 {strides = array<i32>} : memref<1x128xf32, #tpu.memory_space<vmem>>, vector<1x128xf32>,
    } else {
    }
    %3 = tpu.iota {dimensions = array<i32: 0>} : vector<11x256xi32>
    %c0 = arith.constant 0 : index
    %c0_1 = arith.constant 0 : index
    %c0_2 = arith.constant 0 : index
    %4 = vector.load %arg3[%c0, %c0_1, %c0_2] : memref<1x11x256xf32, #tpu.memory_space<vmem>>, vector<1x11x256xf32>
    %5 = vector.shape_cast %4 : vector<1x11x256xf32> to vector<11x256xf32>
    %c0_3 = arith.constant 0 : index
    %c0_4 = arith.constant 0 : index
    %c0_5 = arith.constant 0 : index
    %6 = vector.load %arg4[%c0_3, %c0_4, %c0_5] : memref<1x1x256xi32, #tpu.memory_space<vmem>>, vector<1x1x256xi32>
    %7 = vector.shape_cast %6 : vector<1x1x256xi32> to vector<1x256xi32>
    %cst = arith.constant dense<0xFF800000> : vector<256xf32>
    %8 = vector.multi_reduction <maximumf>, %5, %cst [0] : vector<11x256xf32> to vector<256xf32>
    %9 = vector.shape_cast %8 : vector<256xf32> to vector<1x256xf32>
    %10 = vector.broadcast %9 : vector<1x256xf32> to vector<11x256xf32>
    %11 = arith.subf %5, %10 : vector<11x256xf32>
    %12 = math.exp %11 : vector<11x256xf32>
    %cst_6 = arith.constant dense<0.000000e+00> : vector<256xf32>
    %13 = vector.multi_reduction <add>, %12, %cst_6 [0] : vector<11x256xf32> to vector<256xf32>
    %14 = vector.shape_cast %13 : vector<256xf32> to vector<1x256xf32>
    %15 = tpu.reciprocal %14 {approx = true} : vector<1x256xf32> -> vector<1x256xf32>
    %16 = arith.mulf %14, %15 : vector<1x256xf32>
    %cst_7 = arith.constant 2.000000e+00 : f32
    %17 = vector.broadcast %cst_7 : f32 to vector<1x256xf32>
    %18 = arith.subf %17, %16 : vector<1x256xf32>
    %19 = arith.mulf %15, %18 : vector<1x256xf32>
    %20 = vector.broadcast %19 : vector<1x256xf32> to vector<11x256xf32>
    %21 = arith.mulf %12, %20 : vector<11x256xf32>
    %22 = math.log %14 : vector<1x256xf32>
    %23 = vector.broadcast %7 : vector<1x256xi32> to vector<11x256xi32>
    %24 = arith.cmpi eq, %3, %23 : vector<11x256xi32>
    %cst_8 = arith.constant 0.000000e+00 : f32
    %25 = vector.broadcast %cst_8 : f32 to vector<11x256xf32>
    %26 = arith.select %24, %11, %25 : vector<11x256xi1>, vector<11x256xf32>
    %cst_9 = arith.constant dense<0.000000e+00> : vector<256xf32>
    %27 = vector.multi_reduction <add>, %26, %cst_9 [0] : vector<11x256xf32> to vector<256xf32>
    %28 = vector.shape_cast %27 : vector<256xf32> to vector<1x256xf32>
    %29 = arith.subf %22, %28 : vector<1x256xf32>
    %c0_10 = arith.constant 0 : index
    %c0_11 = arith.constant 0 : index
    %30 = vector.load %arg9[%c0_10, %c0_11] : memref<11x128xf32, #tpu.memory_space<vmem>>, vector<11x128xf32>
    %cst_12 = arith.constant 0.000000e+00 : f32
    %31 = vector.broadcast %cst_12 : f32 to vector<11x256xf32>
    %32 = arith.select %24, %21, %31 : vector<11x256xi1>, vector<11x256xf32>
    %33 = vector.extract_strided_slice %32 {offsets = [0, 0], sizes = [11, 128], strides = [1, 1]} : vector<11x256xf32> to vector<11x128xf32>
    %34 = vector.extract_strided_slice %32 {offsets = [0, 128], sizes = [11, 128], strides = [1, 1]} : vector<11x256xf32> to vector<11x128xf32>
    %35 = arith.addf %33, %34 : vector<11x128xf32>
    %36 = arith.addf %30, %35 : vector<11x128xf32>
    %c0_13 = arith.constant 0 : index
    %c0_14 = arith.constant 0 : index
    %37 = vector.load %arg9[%c0_13, %c0_14] : memref<11x128xf32, #tpu.memory_space<vmem>>, vector<11x128xf32>
    tpu.vector_store %arg9[%c0_13, %c0_14], %36 {strides = array<i32>} : memref<11x128xf32, #tpu.memory_space<vmem>>, vector<11x128xf32>,
    %c0_15 = arith.constant 0 : index
    %c0_16 = arith.constant 0 : index
    %38 = vector.load %arg10[%c0_15, %c0_16] : memref<11x128xf32, #tpu.memory_space<vmem>>, vector<11x128xf32>
    %39 = vector.extract_strided_slice %21 {offsets = [0, 0], sizes = [11, 128], strides = [1, 1]} : vector<11x256xf32> to vector<11x128xf32>
    %40 = vector.extract_strided_slice %21 {offsets = [0, 128], sizes = [11, 128], strides = [1, 1]} : vector<11x256xf32> to vector<11x128xf32>
    %41 = arith.addf %39, %40 : vector<11x128xf32>
    %42 = arith.addf %38, %41 : vector<11x128xf32>
    %c0_17 = arith.constant 0 : index
    %c0_18 = arith.constant 0 : index
    %43 = vector.load %arg10[%c0_17, %c0_18] : memref<11x128xf32, #tpu.memory_space<vmem>>, vector<11x128xf32>
    tpu.vector_store %arg10[%c0_17, %c0_18], %42 {strides = array<i32>} : memref<11x128xf32, #tpu.memory_space<vmem>>, vector<11x128xf32>,
    %c0_19 = arith.constant 0 : index
    %c0_20 = arith.constant 0 : index
    %44 = vector.load %arg11[%c0_19, %c0_20] : memref<11x128xf32, #tpu.memory_space<vmem>>, vector<11x128xf32>
    %cst_21 = arith.constant 1.000000e+00 : f32
    %cst_22 = arith.constant 0.000000e+00 : f32
    %45 = vector.broadcast %cst_21 : f32 to vector<11x256xf32>
    %46 = vector.broadcast %cst_22 : f32 to vector<11x256xf32>
    %47 = arith.select %24, %45, %46 : vector<11x256xi1>, vector<11x256xf32>
    %48 = vector.extract_strided_slice %47 {offsets = [0, 0], sizes = [11, 128], strides = [1, 1]} : vector<11x256xf32> to vector<11x128xf32>
    %49 = vector.extract_strided_slice %47 {offsets = [0, 128], sizes = [11, 128], strides = [1, 1]} : vector<11x256xf32> to vector<11x128xf32>
    %50 = arith.addf %48, %49 : vector<11x128xf32>
    %51 = arith.addf %44, %50 : vector<11x128xf32>
    %c0_23 = arith.constant 0 : index
    %c0_24 = arith.constant 0 : index
    %52 = vector.load %arg11[%c0_23, %c0_24] : memref<11x128xf32, #tpu.memory_space<vmem>>, vector<11x128xf32>
    tpu.vector_store %arg11[%c0_23, %c0_24], %51 {strides = array<i32>} : memref<11x128xf32, #tpu.memory_space<vmem>>, vector<11x128xf32>,
    %c0_25 = arith.constant 0 : index
    %c0_26 = arith.constant 0 : index
    %53 = vector.load %arg12[%c0_25, %c0_26] : memref<1x128xf32, #tpu.memory_space<vmem>>, vector<1x128xf32>
    %54 = vector.extract_strided_slice %29 {offsets = [0, 0], sizes = [1, 128], strides = [1, 1]} : vector<1x256xf32> to vector<1x128xf32>
    %55 = vector.extract_strided_slice %29 {offsets = [0, 128], sizes = [1, 128], strides = [1, 1]} : vector<1x256xf32> to vector<1x128xf32>
    %56 = arith.addf %54, %55 : vector<1x128xf32>
    %57 = arith.addf %53, %56 : vector<1x128xf32>
    %c0_27 = arith.constant 0 : index
    %c0_28 = arith.constant 0 : index
    %58 = vector.load %arg12[%c0_27, %c0_28] : memref<1x128xf32, #tpu.memory_space<vmem>>, vector<1x128xf32>
    tpu.vector_store %arg12[%c0_27, %c0_28], %57 {strides = array<i32>} : memref<1x128xf32, #tpu.memory_space<vmem>>, vector<1x128xf32>,
    %c0_i32_29 = arith.constant 0 : i32
    %59 = arith.cmpi eq, %arg2, %c0_i32_29 : i32
    %60 = arith.extui %59 : i1 to i32
    %c0_i32_30 = arith.constant 0 : i32
    %61 = arith.cmpi ne, %60, %c0_i32_30 : i32
    scf.if %61 {
      %c0_31 = arith.constant 0 : index
      %c0_32 = arith.constant 0 : index
      %62 = vector.load %arg9[%c0_31, %c0_32] : memref<11x128xf32, #tpu.memory_space<vmem>>, vector<11x128xf32>
      %c0_33 = arith.constant 0 : index
      %c0_34 = arith.constant 0 : index
      %c0_35 = arith.constant 0 : index
      %c0_36 = arith.constant 0 : index
      %63 = vector.load %arg5[%c0_33, %c0_34, %c0_35, %c0_36] : memref<1x1x11x128xf32, #tpu.memory_space<vmem>>, vector<1x1x11x128xf32>
      %64 = vector.shape_cast %63 : vector<1x1x11x128xf32> to vector<11x128xf32>
      %65 = vector.shape_cast %62 : vector<11x128xf32> to vector<1x1x11x128xf32>
      tpu.vector_store %arg5[%c0_33, %c0_34, %c0_35, %c0_36], %65 {strides = array<i32>} : memref<1x1x11x128xf32, #tpu.memory_space<vmem>>, vector<1x1x11x128xf32>,
      %c0_37 = arith.constant 0 : index
      %c0_38 = arith.constant 0 : index
      %66 = vector.load %arg10[%c0_37, %c0_38] : memref<11x128xf32, #tpu.memory_space<vmem>>, vector<11x128xf32>
      %c0_39 = arith.constant 0 : index
      %c0_40 = arith.constant 0 : index
      %c0_41 = arith.constant 0 : index
      %c0_42 = arith.constant 0 : index
      %67 = vector.load %arg6[%c0_39, %c0_40, %c0_41, %c0_42] : memref<1x1x11x128xf32, #tpu.memory_space<vmem>>, vector<1x1x11x128xf32>
      %68 = vector.shape_cast %67 : vector<1x1x11x128xf32> to vector<11x128xf32>
      %69 = vector.shape_cast %66 : vector<11x128xf32> to vector<1x1x11x128xf32>
      tpu.vector_store %arg6[%c0_39, %c0_40, %c0_41, %c0_42], %69 {strides = array<i32>} : memref<1x1x11x128xf32, #tpu.memory_space<vmem>>, vector<1x1x11x128xf32>,
      %c0_43 = arith.constant 0 : index
      %c0_44 = arith.constant 0 : index
      %70 = vector.load %arg11[%c0_43, %c0_44] : memref<11x128xf32, #tpu.memory_space<vmem>>, vector<11x128xf32>
      %c0_45 = arith.constant 0 : index
      %c0_46 = arith.constant 0 : index
      %c0_47 = arith.constant 0 : index
      %c0_48 = arith.constant 0 : index
      %71 = vector.load %arg7[%c0_45, %c0_46, %c0_47, %c0_48] : memref<1x1x11x128xf32, #tpu.memory_space<vmem>>, vector<1x1x11x128xf32>
      %72 = vector.shape_cast %71 : vector<1x1x11x128xf32> to vector<11x128xf32>
      %73 = vector.shape_cast %70 : vector<11x128xf32> to vector<1x1x11x128xf32>
      tpu.vector_store %arg7[%c0_45, %c0_46, %c0_47, %c0_48], %73 {strides = array<i32>} : memref<1x1x11x128xf32, #tpu.memory_space<vmem>>, vector<1x1x11x128xf32>,
      %c0_49 = arith.constant 0 : index
      %c0_50 = arith.constant 0 : index
      %74 = vector.load %arg12[%c0_49, %c0_50] : memref<1x128xf32, #tpu.memory_space<vmem>>, vector<1x128xf32>
      %c0_51 = arith.constant 0 : index
      %c0_52 = arith.constant 0 : index
      %c0_53 = arith.constant 0 : index
      %c0_54 = arith.constant 0 : index
      %75 = vector.load %arg8[%c0_51, %c0_52, %c0_53, %c0_54] : memref<1x1x1x128xf32, #tpu.memory_space<vmem>>, vector<1x1x1x128xf32>
      %76 = vector.shape_cast %75 : vector<1x1x1x128xf32> to vector<1x128xf32>
      %77 = vector.shape_cast %74 : vector<1x128xf32> to vector<1x1x1x128xf32>
      tpu.vector_store %arg8[%c0_51, %c0_52, %c0_53, %c0_54], %77 {strides = array<i32>} : memref<1x1x1x128xf32, #tpu.memory_space<vmem>>, vector<1x1x1x128xf32>,
    } else {
    }
    return
  }
  func.func @transform_0(%arg0: i32, %arg1: i32, %arg2: i32) -> (i32, i32, i32) {
    %c1_i32 = arith.constant 1 : i32
    %0 = arith.muli %arg1, %c1_i32 : i32
    %1 = arith.addi %0, %arg2 : i32
    %c0_i32 = arith.constant 0 : i32
    %c0_i32_0 = arith.constant 0 : i32
    return %arg0, %c0_i32, %1 : i32, i32, i32
  }
  func.func @transform_1(%arg0: i32, %arg1: i32, %arg2: i32) -> (i32, i32, i32) {
    %c1_i32 = arith.constant 1 : i32
    %0 = arith.muli %arg1, %c1_i32 : i32
    %1 = arith.addi %0, %arg2 : i32
    %c0_i32 = arith.constant 0 : i32
    %c0_i32_0 = arith.constant 0 : i32
    return %arg0, %c0_i32, %1 : i32, i32, i32
  }
  func.func @transform_2(%arg0: i32, %arg1: i32, %arg2: i32) -> (i32, i32, i32, i32) {
    %c0_i32 = arith.constant 0 : i32
    %c0_i32_0 = arith.constant 0 : i32
    %c0_i32_1 = arith.constant 0 : i32
    return %arg0, %arg1, %c0_i32, %c0_i32_0 : i32, i32, i32, i32
  }
  func.func @transform_3(%arg0: i32, %arg1: i32, %arg2: i32) -> (i32, i32, i32, i32) {
    %c0_i32 = arith.constant 0 : i32
    %c0_i32_0 = arith.constant 0 : i32
    %c0_i32_1 = arith.constant 0 : i32
    return %arg0, %arg1, %c0_i32, %c0_i32_0 : i32, i32, i32, i32
  }
  func.func @transform_4(%arg0: i32, %arg1: i32, %arg2: i32) -> (i32, i32, i32, i32) {
    %c0_i32 = arith.constant 0 : i32
    %c0_i32_0 = arith.constant 0 : i32
    %c0_i32_1 = arith.constant 0 : i32
    return %arg0, %arg1, %c0_i32, %c0_i32_0 : i32, i32, i32, i32
  }
  func.func @transform_5(%arg0: i32, %arg1: i32, %arg2: i32) -> (i32, i32, i32, i32) {
    %c0_i32 = arith.constant 0 : i32
    %c0_i32_0 = arith.constant 0 : i32
    %c0_i32_1 = arith.constant 0 : i32
    return %arg0, %arg1, %c0_i32, %c0_i32_0 : i32, i32, i32, i32
  }
}

</mosaic_0001>

<bundles_post_ra>
// kernel: tpu_custom_call.1
= control target key start
LH: loop header
LB: loop body
LE: loop exit
PB: predicated region body
PF: predicated region fallthrough
CT: control target
= control target key end

     0   :  { %11 = vsyncpa [#allocation7], 0  ;;  %s1195_s0 = inlined_call_operand.vmem [shape: f32[2,11,256], index: 0, kind: input, shape index: {}]   ;;  %s1196_s1 = inlined_call_operand.vmem [shape: s32[2,1,256], index: 1, kind: input, shape index: {}]   ;;  %s1197_s2 = inlined_call_operand.vmem [shape: f32[2,1,11,128], index: 2, kind: output, shape index: {0}]   ;;  %s1198_s3 = inlined_call_operand.vmem [shape: f32[2,1,11,128], index: 3, kind: output, shape index: {1}]   ;;  %s1199_s4 = inlined_call_operand.vmem [shape: f32[2,1,11,128], index: 4, kind: output, shape index: {2}]   ;;  %s1200_s5 = inlined_call_operand.hbm [shape: f32[2,1,1,128], index: 5, kind: output, shape index: {3}]  }
   0x1   :  { %13 = vsyncpa [#allocation7 + $0x1], 0  ;;  %s1004_s18 = smov 0   ;;  %s1006_s19 = smov 0  }
   0x2   :  { %s1008_s20 = smov 0   ;;  %s1010_s21 = smov 0  }
   0x3   :  { %s1012_s22 = smov 0   ;;  %s1014_s23 = smov 0  }
   0x4 LB: > { %s801_s24 = sadd.s32 4294967295, %s970_s23   ;;  %s802_s25 = sadd.s32 4294967294, %s970_s23   ;;  %s970_s23 = sphi %s1014_s23, %s19_s23   ;;  %s966_s22 = sphi %s1012_s22, %s1207_s22   ;;  %s962_s21 = sphi %s1010_s21, %s1206_s21   ;;  %s958_s20 = sphi %s1008_s20, %s1205_s20   ;;  %s954_s19 = sphi %s1006_s19, %s1204_s19   ;;  %s950_s18 = sphi %s1004_s18, %s1203_s18  }
   0x5   : > { %s38_s26 = sadd.s32 1, %s966_s22  ;;  %s191_s27 = sadd.s32 1, %s958_s20 }
   0x6   : > { %p40_p0 = scmp.ge.s32.totalorder %s38_s26, 2  ;;  %p201_p1 = scmp.ne.s32.totalorder %s958_s20, %s954_s19 }
   0x7   : > { %p202_p2 = scmp.eq.s32.totalorder %s801_s24, 1  ;;  %p207_p3 = scmp.ne.s32.totalorder %s954_s19, %s950_s18 }
   0x8   : > { %s1209_s26 = smov (%p40_p0, %s38_s26), 0  ;;  %p208_p5 = scmp.eq.s32.totalorder %s802_s25, 1 }
   0x9   : > { %p1044_p4 = por %p202_p2, %p201_p1  ;;  %s186_s29 = ssub.s32 %s966_s22, %s1209_s26 }
   0xa   : > { %p805_p6 = scmp.ge.s32.totalorder %s970_s23, 1  ;;  %p189_p7 = scmp.eq.s32.totalorder %s186_s29, 0 }
   0xb   : > { %p1051_p8 = por %p208_p5, %p207_p3  ;;  %p255_p9 = scmp.lt.s32.totalorder %s970_s23, 3 }
   0xc   : > { %s1057_s6 = scalar_select %p189_p7, %s958_s20, %s191_s27  }
   0xd   : > { %p256_p10 = pnand %p805_p6, %p255_p9 }
   0xe   : > { %p325_p11 = scmp.lt.s32.totalorder (!%p256_p10), %s962_s21, 1  ;;  %s321_s27 = sand.u32 (!%p256_p10), 1, %s954_s19  }
   0xf   : > { %259 = sbr.rel (%p256_p10) target bundleno = 123 (0x7b), region = 28  ;;  %s815_s14 = sshll.u32 (!%p256_p10), %s962_s21, 4 }
  0x10   : > { %s568_s24 = scalar_lea.sflag (!%p256_p10), [#allocation7], %s321_s27  ;;  %s973_s29 = smov (!%p256_p10), [#allocation6]  }
  0x14   : > { %v384_v0 = vlaneseq  ;;  %v972_v1 = vmov 0.0   ;;  %s326_s7 = scalar_select %p325_p11, %s962_s21, 1  ;;  %vm392_vm0 = vcmask 1042432  }
  0x15   : > { %383 = vst [vmem:[#allocation5] sm:$0x1] %v972_v1  ;;  %378 = vst [vmem:[#allocation2 + $0x8] sm:$0x7] %v972_v1 }
  0x16   : > { %380 = vst [vmem:[#allocation3] sm:$0x7] %v972_v1  ;;  %382 = vst [vmem:[#allocation4] sm:$0x7] %v972_v1  ;;  %v1061_v2 = vshrl.u32 %v384_v0, 7  ;;  %s818_s8 = sshll.u32 %s326_s7, 5 }
  0x17   : > { %s808_s9 = sshll.u32 %s326_s7, 1  ;;  %s332_s12 = scalar_lea.vmem %s1195_s0, %s818_s8 }
  0x18   : > { %v455_v3 = vsub.s32 0, %v1061_v2  ;;  %v459_v4 = vsub.s32 1, %v1061_v2  ;;  %s343_s15 = scalar_lea.vmem %s1196_s1, %s808_s9  ;;  %v1072_v5 = vadd.s32 8, %v1061_v2  ;;  %v387_v6 = vld [vmem:[%s332_s12] sm:$0xff]  ;;  %v388_v7 = vld [vmem:[%s332_s12 + $0x8] sm:$0xff]  ;;  %s1086_s16 = sshll.u32 %s326_s7, 4 }
  0x19   : > { %v389_v8 = vld [vmem:[%s332_s12 + $0x10] sm:$0x7]  ;;  %v390_v9 = vld [vmem:[%s332_s12 + $0x18] sm:$0x7]  ;;  %v391_v10 = vld [vmem:[%s343_s15] sm:$0x3]  ;;  %s372_s25 = scalar_lea.vmem %s1199_s4, %s1086_s16  ;;  %s1139_s8 = scalar_lea.vmem %s1198_s3, %s1086_s16 }
  0x1a   : > { %v393_v11 = vsel %vm392_vm0, %v389_v8, -inf  ;;  %v401_v13 = vsel %vm392_vm0, %v390_v9, -inf  ;;  %v1076_v14 = vrot.slane %v391_v10, %v455_v3  ;;  %v1078_v15 = vrot.slane %v391_v10, %v459_v4  ;;  %s1145_s11 = scalar_lea.vmem %s1197_s2, %s1086_s16  ;;  %s322_s12 = scalar_lea.vmem [#allocation6], %s321_s27 }
  0x1b   : > { %v394_v12 = vmax.f32 %v387_v6, %v393_v11  ;;  %v402_v16 = vmax.f32 %v388_v7, %v401_v13  ;;  %s590_s13 = sshll.u32 %s322_s12, 4  ;;  %s588_s16 = scalar_lea.hbm %s1200_s5, %s815_s14  ;;  %s1150_s13 = int_to_ptr.vmem [resolvable:$true] %s590_s13 }
  0x1c   : > { %vm461_vm1 = vcmp.eq.s32.totalorder %v1061_v2, %v1076_v14  ;;  %vm462_vm2 = vcmp.eq.s32.totalorder %v1061_v2, %v1078_v15  ;;  %vm463_vm3 = vcmp.eq.s32.totalorder %v1072_v5, %v1076_v14  ;;  %vm464_vm4 = vcmp.eq.s32.totalorder %v1072_v5, %v1078_v15  ;;  %s898_s7 = sshll.u32 %s973_s29, 4  ;;  %s899_s7 = int_to_ptr.vmem [resolvable:$false] %s898_s7 }
  0x1d   : > { %v395_v17 = vrot.slane %v394_v12, 4  ;;  %v403_v18 = vrot.slane %v402_v16, 4  ;;  %v509_v19 = vsel %vm461_vm1, 1.0, %v972_v1  ;;  %v510_v20 = vsel %vm462_vm2, 1.0, %v972_v1  ;;  %v508_v23 = vld [vmem:[#allocation4] sm:$0x7]  ;;  %p901_p1 = scmp.lt.s32.totalorder %s1150_s13, %s899_s7 }
  0x1e   : > { %v513_v22 = vadd.f32 %v510_v20, %v509_v19  ;;  %v511_v24 = vsel %vm463_vm3, 1.0, %v972_v1  ;;  %v512_v25 = vsel %vm464_vm4, 1.0, %v972_v1  ;;  %s900_s21 = scalar_lea.vmem %s899_s7, 32 }
  0x1f   : > { %v396_v21 = vmax.f32 %v394_v12, %v395_v17  ;;  %v404_v26 = vmax.f32 %v402_v16, %v403_v18  ;;  %v514_v27 = vadd.f32 %v512_v25, %v511_v24 }
  0x20   : > { %536 = vst [vmem:[%s372_s25] sm:$0xff] %v513_v22 }
  0x21   : > { %v397_v28 = vrot.slane %v396_v21, 2  ;;  %v405_v29 = vrot.slane %v404_v26, 2  ;;  %v516_v30 = vadd.f32 %v514_v27, %v508_v23 }
  0x23   : > { %v398_v31 = vmax.f32 %v396_v21, %v397_v28  ;;  %v406_v32 = vmax.f32 %v404_v26, %v405_v29  ;;  %518 = vst [vmem:[#allocation4] sm:$0x7] %v516_v30 }
  0x25   : > { %v399_v33 = vrot.slane %v398_v31, 1  ;;  %v407_v34 = vrot.slane %v406_v32, 1 }
  0x27   : > { %v400_v35 = vmax.f32 %v398_v31, %v399_v33  ;;  %v408_v36 = vmax.f32 %v406_v32, %v407_v34 }
  0x29   : > { %v409_v37 = vsub.f32 %v387_v6, %v400_v35  ;;  %v411_v38 = vsub.f32 %v389_v8, %v400_v35  ;;  %v410_v39 = vsub.f32 %v388_v7, %v408_v36  ;;  %v412_v40 = vsub.f32 %v390_v9, %v408_v36 }
  0x2a   : > { %v535_v45 = vld [vmem:[#allocation4] sm:$0x7] }
  0x2b   : > { %v413_v41 = vmul.f32 1.442695, %v409_v37  ;;  %v417_v42 = vmul.f32 1.442695, %v411_v38  ;;  %v415_v43 = vmul.f32 1.442695, %v410_v39 }
  0x2c   : > { %v419_v44 = vmul.f32 1.442695, %v412_v40  ;;  %537 = vst [vmem:[%s372_s25 + $0x8] sm:$0x7] %v535_v45  ;;  %v467_v49 = vsel %vm463_vm3, %v411_v38, 0.0  ;;  %v468_v52 = vsel %vm464_vm4, %v412_v40, 0.0 }
  0x2d   : > { %878 = vpow2.f32 %v413_v41  ;;  %v465_v56 = vsel %vm461_vm1, %v409_v37, 0.0  ;;  %v469_v57 = vsel %vm392_vm0, %v467_v49, 0.0  ;;  %v466_v59 = vsel %vm462_vm2, %v410_v39, 0.0  ;;  %v519_v40 = vld [vmem:[#allocation5] sm:$0x1]  ;;  %s894_s25 = scalar_lea.vmem %s1150_s13, 16 }
  0x2e   : > { %880 = vpow2.f32 %v415_v43  ;;  %v477_v60 = vsel %vm392_vm0, %v468_v52, 0.0  ;;  %v470_v63 = vadd.f32 %v469_v57, %v465_v56  ;;  %p895_p12 = scmp.ne.s32.totalorder %s1150_s13, %s894_s25  ;;  %p902_p2 = scmp.lt.s32.totalorder %s900_s21, %s894_s25 }
  0x2f   : > { %882 = vpow2.f32 %v417_v42  ;;  %v478_v1 = vadd.f32 %v477_v60, %v466_v59 }
  0x30   : > { %884 = vpow2.f32 %v419_v44  ;;  %v471_v7 = vrot.slane %v470_v63, 4  ;;  %p896_p13 = pnand %p895_p12, %p1044_p4  ;;  %p903_p3 = por %p902_p2, %p901_p1 }
  0x31   : > { %v479_v9 = vrot.slane %v478_v1, 4 }
  0x32   : > { %v472_v13 = vadd.f32 %v471_v7, %v470_v63  ;;  %p897_p0 = pneg %p896_p13 }
  0x33   : > { %v480_v17 = vadd.f32 %v479_v9, %v478_v1 }
  0x34   : > { %v473_v18 = vrot.slane %v472_v13, 2  ;;  %p904_p5 = pnand %p903_p3, %p897_p0 }
  0x35   : > { %v481_v19 = vrot.slane %v480_v17, 2 }
  0x36   : > { %v474_v20 = vadd.f32 %v473_v18, %v472_v13 }
  0x37   : > { %v482_v21 = vadd.f32 %v481_v19, %v480_v17 }
  0x38   : > { %v475_v22 = vrot.slane %v474_v20, 1 }
  0x39   : > { %v483_v23 = vrot.slane %v482_v21, 1 }
  0x3a   : > { %v879_v46 = vpop.eup %878  ;;  %v476_v26 = vadd.f32 %v475_v22, %v474_v20 }
  0x3b   : > { %v881_v47 = vpop.eup %880  ;;  %v484_v29 = vadd.f32 %v483_v23, %v482_v21 }
  0x3c   : > { %v883_v48 = vpop.eup %882 }
  0x3d   : > { %v885_v50 = vpop.eup %884  ;;  %v421_v51 = vsel %vm392_vm0, %v883_v48, 0.0 }
  0x3e   : > { %v422_v53 = vadd.f32 %v879_v46, %v421_v51  ;;  %v429_v54 = vsel %vm392_vm0, %v885_v50, 0.0 }
  0x3f   : > { %v430_v55 = vadd.f32 %v881_v47, %v429_v54 }
  0x40   : > { %v423_v58 = vrot.slane %v422_v53, 4 }
  0x41   : > { %v431_v61 = vrot.slane %v430_v55, 4 }
  0x42   : > { %v424_v62 = vadd.f32 %v423_v58, %v422_v53  ;;  %v500_v53 = vld [vmem:[#allocation3] sm:$0x7] }
  0x43   : > { %v432_v0 = vadd.f32 %v431_v61, %v430_v55 }
  0x44   : > { %v425_v3 = vrot.slane %v424_v62, 2 }
  0x45   : > { %v433_v4 = vrot.slane %v432_v0, 2 }
  0x46   : > { %v426_v6 = vadd.f32 %v425_v3, %v424_v62 }
  0x47   : > { %v434_v8 = vadd.f32 %v433_v4, %v432_v0 }
  0x48   : > { %v427_v10 = vrot.slane %v426_v6, 1 }
  0x49   : > { %v435_v11 = vrot.slane %v434_v8, 1 }
  0x4a   : > { %v428_v12 = vadd.f32 %v427_v10, %v426_v6 }
  0x4b   : > { %v436_v16 = vadd.f32 %v435_v11, %v434_v8 }
  0x4c   : > { %886 = vrcp.f32 %v428_v12 }
  0x4d   : > { %888 = vrcp.f32 %v436_v16 }
  0x4e   : > { %890 = vlog2.f32 %v428_v12 }
  0x4f   : > { %892 = vlog2.f32 %v436_v16 }
  0x59   : > { %v887_v24 = vpop.eup %886 }
  0x5a   : > { %v889_v25 = vpop.eup %888  ;;  %v439_v27 = vmul.f32 %v887_v24, %v428_v12 }
  0x5b   : > { %v891_v28 = vpop.eup %890  ;;  %v440_v30 = vmul.f32 %v889_v25, %v436_v16 }
  0x5c   : > { %v893_v31 = vpop.eup %892  ;;  %v450_v32 = vmul.f32 0.6931472, %v891_v28  ;;  %v441_v33 = vsub.f32 2.0, %v439_v27 }
  0x5d   : > { %v452_v34 = vmul.f32 0.6931472, %v893_v31  ;;  %v442_v35 = vsub.f32 2.0, %v440_v30 }
  0x5e   : > { %v485_v36 = vsub.f32 %v450_v32, %v476_v26  ;;  %v443_v37 = vmul.f32 %v887_v24, %v441_v33 }
  0x5f   : > { %v486_v38 = vsub.f32 %v452_v34, %v484_v29  ;;  %v444_v39 = vmul.f32 %v889_v25, %v442_v35 }
  0x60   : > { %v445_v41 = vmul.f32 %v879_v46, %v443_v37  ;;  %v447_v42 = vmul.f32 %v883_v48, %v443_v37  ;;  %v488_v48 = vld [vmem:[#allocation2 + $0x8] sm:$0x7] }
  0x61   : > { %v520_v43 = vadd.f32 %v486_v38, %v485_v36  ;;  %v446_v44 = vmul.f32 %v881_v47, %v444_v39  ;;  %v448_v45 = vmul.f32 %v885_v50, %v444_v39 }
  0x62   : > { %v489_v49 = vsel %vm461_vm1, %v445_v41, 0.0  ;;  %v491_v51 = vsel %vm463_vm3, %v447_v42, 0.0 }
  0x63   : > { %v521_v52 = vadd.f32 %v520_v43, %v519_v40  ;;  %v490_v46 = vsel %vm462_vm2, %v446_v44, 0.0  ;;  %v492_v47 = vsel %vm464_vm4, %v448_v45, 0.0  ;;  %v501_v50 = vadd.f32 %v446_v44, %v445_v41 }
  0x64   : > { %v493_v54 = vadd.f32 %v490_v46, %v489_v49  ;;  %v494_v55 = vadd.f32 %v492_v47, %v491_v51  ;;  %v502_v56 = vadd.f32 %v448_v45, %v447_v42 }
  0x65   : > { %522 = vst [vmem:[#allocation5] sm:$0x1] %v521_v52  ;;  %532 = vst [vmem:[%s1139_s8] sm:$0xff] %v501_v50 }
  0x66   : > { %v496_v2 = vadd.f32 %v494_v55, %v488_v48  ;;  %v504_v5 = vadd.f32 %v502_v56, %v500_v53  ;;  %528 = vst [vmem:[%s1145_s11] sm:$0xff] %v493_v54 }
  0x68   : > { %498 = vst [vmem:[#allocation2 + $0x8] sm:$0x7] %v496_v2  ;;  %506 = vst [vmem:[#allocation3] sm:$0x7] %v504_v5 }
  0x6c   : > { %v538_v14 = vld [vmem:[#allocation5] sm:$0x1] }
  0x6d   : > { %539 = vst [vmem:[%s322_s12] sm:$0x1] %v538_v14 }
  0x6e   : > { %907 = shalt.err (!%p904_p5)
}
  0x6f   : > { %s908_s9 = scalar_lea.hbm %s588_s16, 16  ;;  %s912_s12 = scalar_lea.hbm %s1200_s5, 32 }
  0x70   : > { %p909_p6 = scmp.ne.s32.totalorder %s588_s16, %s908_s9  ;;  %p913_p10 = scmp.lt.s32.totalorder %s588_s16, %s1200_s5 }
  0x71   : > { %p914_p11 = scmp.lt.s32.totalorder %s912_s12, %s908_s9 }
  0x72   : > { %p910_p7 = pnand %p909_p6, %p1044_p4 }
  0x73   : > { %p915_p12 = por %p914_p11, %p913_p10 }
  0x74   : > { %p911_p9 = pneg %p910_p7 }
  0x76   : > { %p916_p13 = pnand %p915_p12, %p911_p9 }
  0x78   : > { %919 = shalt.err (!%p916_p13)
}
  0x79   : > { %822 = dma.vmem_to_hbm [thread:$0]  (%p1044_p4), %s1150_s13, 16, %s588_s16, %s568_s24   ;;  %v527_v15 = vld [vmem:[#allocation2 + $0x8] sm:$0x7]  ;;  %v531_v57 = vld [vmem:[#allocation3] sm:$0x7] }
  0x7a   : > { %529 = vst [vmem:[%s1145_s11 + $0x8] sm:$0x7] %v527_v15  ;;  %533 = vst [vmem:[%s1139_s8 + $0x8] sm:$0x7] %v531_v57 }
  0x7b PF: > { %p828_p0 = scmp.ge.s32.totalorder %s970_s23, 2  ;;  %s638_s17 = sand.u32 1, %s950_s18  }
  0x7c   : > { %s639_s25 = scalar_lea.sflag [#allocation7], %s638_s17 }
  0x7d   : > { %p825_p1 = pnand %p828_p0, %p1051_p8 }
  0x7f   : > { %p826_p2 = pneg %p825_p1 }
  0x81   : > { %945 = dma.done.wait (%p826_p2), %s639_s25, 16  }
  0x82   : > { %947 = vsyncadd (%p826_p2), %s639_s25, 4294967280  ;;  %s19_s23 = sadd.s32 1, %s970_s23   ;;  %s1203_s18 = smov %s954_s19 }
  0x83   : > { %p16_p3 = scmp.ge.s32.totalorder %s19_s23, 4   ;;  %s1204_s19 = smov %s958_s20 }
  0x84   : > { %s1205_s20 = smov %s1057_s6  ;;  %s1206_s21 = smov %s966_s22 }
  0x85   : > { %s1207_s22 = smov %s1209_s26  ;;  %18 = sbr.rel (!%p16_p3) target bundleno = 4 (0x4), region = 110 }
  0x8a   :  { %643 = vsyncpa [#allocation7], 1 }
  0x8b   :  { %645 = vsyncpa [#allocation7 + $0x1], 1 }

</bundles_post_ra>
